<compile_context>
chip_gen: v6e
topology: v6e:2x2x1
jax: 0.10.0
libtpu: 0.0.40
codegen_flags: <defaults>
</compile_context>

<pallas_src>
import math

import jax
import jax.numpy as jnp
from jax import lax
from jax.experimental import pallas as pl
from jax.experimental.pallas import tpu as pltpu

_SQRT_2_OVER_PI = math.sqrt(2.0 / math.pi)
_INV_SQRT2 = 1.0 / math.sqrt(2.0)


def _round_up(x, m):
    return ((x + m - 1) // m) * m


def _cdiv(a, b):
    return (a + b - 1) // b


def _default_vmem_limit():
    # ~62% of physical VMEM: ~40 MiB on v7x (64 MiB), capped at 64 MiB on v5e/v6e (128 MiB).
    try:
        cap = pltpu.get_tpu_info().vmem_capacity_bytes
    except Exception:
        cap = 128 * 1024 * 1024
    return int(min(64 * 1024 * 1024, (cap * 5) // 8))


def _gelu_tanh(h):
    # tanh-approximate GELU: transcendental goes to the EUP slot (erf would be a VPU polynomial).
    return 0.5 * h * (1.0 + jnp.tanh(_SQRT_2_OVER_PI * (h + 0.044715 * (h * h * h))))


def _ffn_kernel_accout(x_ref, w1_ref, b1_ref, w2_ref, b2_ref, o_ref):
    # f32 output: accumulate directly into the resident output block (index map ignores k).
    # x_ref: (TM, dim) bf16   w1_ref: (dim, TK) bf16   b1_ref: (1, TK) f32
    # w2_ref: (TK, dim) bf16  b2_ref: (1, dim) f32     o_ref: (TM, dim) f32
    k = pl.program_id(1)

    @pl.when(k == 0)
    def _():
        # Fold the second bias into the accumulator init (saves an epilogue VPU pass).
        o_ref[...] = jnp.broadcast_to(b2_ref[...], o_ref.shape).astype(o_ref.dtype)

    h = jnp.dot(x_ref[...], w1_ref[...], preferred_element_type=jnp.float32) + b1_ref[...]
    h = _gelu_tanh(h)
    o_ref[...] += jnp.dot(
        h.astype(w2_ref.dtype), w2_ref[...], preferred_element_type=jnp.float32
    )


def _ffn_kernel_scratch(x_ref, w1_ref, b1_ref, w2_ref, b2_ref, o_ref, acc_ref):
    # Narrow output dtype: accumulate in an f32 scratch, cast once at the last k step.
    k = pl.program_id(1)

    @pl.when(k == 0)
    def _():
        acc_ref[...] = jnp.broadcast_to(b2_ref[...], acc_ref.shape).astype(jnp.float32)

    h = jnp.dot(x_ref[...], w1_ref[...], preferred_element_type=jnp.float32) + b1_ref[...]
    h = _gelu_tanh(h)
    acc_ref[...] += jnp.dot(
        h.astype(w2_ref.dtype), w2_ref[...], preferred_element_type=jnp.float32
    )

    @pl.when(k == pl.num_programs(1) - 1)
    def _():
        o_ref[...] = acc_ref[...].astype(o_ref.dtype)


def feed_forward(x, w1, b1, w2, b2, *, token_tile=512, hidden_tile=512,
                 max_resident_weight_bytes=None, vmem_limit_bytes=None):
    """x: (batch, seq, dim). Returns (batch, seq, dim) in x.dtype."""
    batch, seq, dim = x.shape
    dim_in, hidden = w1.shape
    assert dim_in == dim and w2.shape == (hidden, dim)
    assert b1.shape == (hidden,) and b2.shape == (dim,)

    out_dtype = x.dtype
    n = batch * seq
    x2d = x.reshape(n, dim)

    if vmem_limit_bytes is None:
        vmem_limit_bytes = _default_vmem_limit()
    if max_resident_weight_bytes is None:
        max_resident_weight_bytes = vmem_limit_bytes // 2

    # --- token (row) tile: multiple of 128 (full MXU-height tiles) ---
    tm = min(_round_up(max(token_tile, 128), 128), _round_up(n, 128))
    if tm > 128 and _cdiv(n, tm) == 1:
        # v7x megacore: make sure the "parallel" token axis has >= 2 blocks when possible.
        tm_half = _round_up(max(128, tm // 2), 128)
        if _cdiv(n, tm_half) >= 2:
            tm = tm_half
    n_pad = _round_up(n, tm)

    # --- hidden (reduction) tile / residency decision ---
    bf16_bytes = jnp.dtype(jnp.bfloat16).itemsize
    weight_bytes = 2 * dim * hidden * bf16_bytes
    if weight_bytes <= max_resident_weight_bytes:
        # Whole weights fit comfortably in VMEM: constant block indices -> DMA'd once, resident.
        tk, hidden_pad = hidden, hidden
    else:
        tk_cap = max(128, (min(hidden_tile, hidden) // 128) * 128)
        tk = next((c for c in range(tk_cap, 0, -128) if hidden % c == 0), None)
        if tk is None:
            # hidden has no multiple-of-128 divisor <= tk_cap: zero-pad the hidden dim.
            # Exact: padded columns give h = 0, gelu(0) = 0, and contribute 0 to the 2nd matmul.
            tk = tk_cap
            hidden_pad = _round_up(hidden, tk)
        else:
            hidden_pad = hidden

    # bf16 operands for native MXU rate + halved weight DMA bytes; f32 accumulation in-kernel.
    x2d = x2d.astype(jnp.bfloat16)
    w1c = w1.astype(jnp.bfloat16)
    w2c = w2.astype(jnp.bfloat16)
    b1c = b1.astype(jnp.float32).reshape(1, hidden)
    b2c = b2.astype(jnp.float32).reshape(1, dim)

    if n_pad != n:
        x2d = jnp.pad(x2d, ((0, n_pad - n), (0, 0)))
    if hidden_pad != hidden:
        w1c = jnp.pad(w1c, ((0, 0), (0, hidden_pad - hidden)))
        w2c = jnp.pad(w2c, ((0, hidden_pad - hidden), (0, 0)))
        b1c = jnp.pad(b1c, ((0, 0), (0, hidden_pad - hidden)))

    grid = (n_pad // tm, hidden_pad // tk)

    acc_in_output = jnp.dtype(out_dtype) == jnp.dtype(jnp.float32)
    kernel = _ffn_kernel_accout if acc_in_output else _ffn_kernel_scratch
    scratch = () if acc_in_output else (pltpu.VMEM((tm, dim), jnp.float32),)

    out2d = pl.pallas_call(
        kernel,
        out_shape=jax.ShapeDtypeStruct((n_pad, dim), out_dtype),
        grid_spec=pltpu.PrefetchScalarGridSpec(
            num_scalar_prefetch=0,
            grid=grid,
            in_specs=[
                pl.BlockSpec((tm, dim), lambda i, k: (i, 0)),    # x tile (resident over k)
                pl.BlockSpec((dim, tk), lambda i, k: (0, k)),    # W1 hidden slab
                pl.BlockSpec((1, tk), lambda i, k: (0, k)),      # b1 slab
                pl.BlockSpec((tk, dim), lambda i, k: (k, 0)),    # W2 hidden slab
                pl.BlockSpec((1, dim), lambda i, k: (0, 0)),     # b2 (constant block)
            ],
            out_specs=pl.BlockSpec((tm, dim), lambda i, k: (i, 0)),
            scratch_shapes=scratch,
        ),
        compiler_params=pltpu.CompilerParams(
            dimension_semantics=("parallel", "arbitrary"),
            vmem_limit_bytes=vmem_limit_bytes,
        ),
    )(x2d, w1c, b1c, w2c, b2c)

    if n_pad != n:
        out2d = out2d[:n]
    return out2d.reshape(batch, seq, dim)


def init_params(key, dim, hidden_dim, dtype=jnp.float32):
    """Deterministic init mimicking nn.Linear's default uniform(-1/sqrt(fan_in), 1/sqrt(fan_in))."""
    k1, k2, k3, k4 = jax.random.split(key, 4)
    bound1 = 1.0 / math.sqrt(dim)
    bound2 = 1.0 / math.sqrt(hidden_dim)
    # stored as (in, out) so the kernel computes x @ W + b
    w1 = jax.random.uniform(k1, (dim, hidden_dim), dtype, -bound1, bound1)
    b1 = jax.random.uniform(k2, (hidden_dim,), dtype, -bound1, bound1)
    w2 = jax.random.uniform(k3, (hidden_dim, dim), dtype, -bound2, bound2)
    b2 = jax.random.uniform(k4, (dim,), dtype, -bound2, bound2)
    return w1, b1, w2, b2


def _reference(x, w1, b1, w2, b2):
    # f32 reference with exact (erf) GELU — matches nn.GELU()'s default.
    x = x.astype(jnp.float32)
    h = x @ w1 + b1
    h = 0.5 * h * (1.0 + lax.erf(h * _INV_SQRT2))
    return h @ w2 + b2


if __name__ == "__main__":
    key = jax.random.PRNGKey(0)
    kx1, kp1, kx2, kp2, kx3, kp3 = jax.random.split(key, 6)

    # Test 1: tiny spec-like shape — resident-weight fast path, f32 accumulate-into-output.
    batch, seq, dim, hidden_dim = 2, 8, 32, 64
    x = jax.random.normal(kx1, (batch, seq, dim), jnp.float32)
    w1, b1, w2, b2 = init_params(kp1, dim, hidden_dim)
    out = jax.block_until_ready(feed_forward(x, w1, b1, w2, b2))
    ref = _reference(x, w1, b1, w2, b2)
    assert out.shape == x.shape
    assert jnp.allclose(out, ref, atol=3e-2, rtol=3e-2), "mismatch vs reference (test 1)"

    # Test 2: token padding + multi-tile token axis + forced hidden-reduction tiling.
    batch, seq, dim, hidden_dim = 2, 100, 128, 384
    x = jax.random.normal(kx2, (batch, seq, dim), jnp.float32)
    w1, b1, w2, b2 = init_params(kp2, dim, hidden_dim)
    out = jax.block_until_ready(
        feed_forward(x, w1, b1, w2, b2, token_tile=128, hidden_tile=128,
                     max_resident_weight_bytes=0)
    )
    ref = _reference(x, w1, b1, w2, b2)
    assert out.shape == x.shape
    assert jnp.allclose(out, ref, atol=3e-2, rtol=3e-2), "mismatch vs reference (test 2)"

    # Test 3: bf16 input (scratch-accumulator path) + hidden not a multiple of 128 (zero-padded).
    batch, seq, dim, hidden_dim = 1, 64, 128, 200
    x = jax.random.normal(kx3, (batch, seq, dim), jnp.bfloat16)
    w1, b1, w2, b2 = init_params(kp3, dim, hidden_dim)
    out = jax.block_until_ready(
        feed_forward(x, w1, b1, w2, b2, token_tile=128, hidden_tile=128,
                     max_resident_weight_bytes=0)
    )
    ref = _reference(x, w1, b1, w2, b2)
    assert out.shape == x.shape
    assert jnp.allclose(out.astype(jnp.float32), ref, atol=5e-2, rtol=5e-2), \
        "mismatch vs reference (test 3)"

    print("KERNEL_OK")
</pallas_src>

<mosaic_0001>
module attributes {stable_mosaic.version = 11 : i64} {
  func.func @_ffn_kernel_accout(%arg0: i32, %arg1: i32, %arg2: memref<128x32xbf16, #tpu.memory_space<vmem>>, %arg3: memref<32x64xbf16, #tpu.memory_space<vmem>>, %arg4: memref<1x64xf32, #tpu.memory_space<vmem>>, %arg5: memref<64x32xbf16, #tpu.memory_space<vmem>>, %arg6: memref<1x32xf32, #tpu.memory_space<vmem>>, %arg7: memref<128x32xf32, #tpu.memory_space<vmem>>) attributes {dimension_semantics = [#tpu.dimension_semantics<parallel>, #tpu.dimension_semantics<arbitrary>], iteration_bounds = array<i64: 1, 1>, scalar_prefetch = 0 : i64, scratch_operands = 0 : i64, tpu.core_type = #tpu.core_type<tc>, window_params = [{transform_indices = @transform_0, window_bounds = array<i64: 128, 32>}, {transform_indices = @transform_1, window_bounds = array<i64: 32, 64>}, {transform_indices = @transform_2, window_bounds = array<i64: 1, 64>}, {transform_indices = @transform_3, window_bounds = array<i64: 64, 32>}, {pipeline_mode = #tpu.pipeline_mode<synchronous>, transform_indices = @transform_4, window_bounds = array<i64: 1, 32>}, {transform_indices = @transform_5, window_bounds = array<i64: 128, 32>}]} {
    %c0_i32 = arith.constant 0 : i32
    %0 = arith.cmpi eq, %arg1, %c0_i32 : i32
    %1 = arith.extui %0 : i1 to i32
    %c0_i32_0 = arith.constant 0 : i32
    %2 = arith.cmpi ne, %1, %c0_i32_0 : i32
    scf.if %2 {
      %c0_17 = arith.constant 0 : index
      %c0_18 = arith.constant 0 : index
      %28 = vector.load %arg6[%c0_17, %c0_18] : memref<1x32xf32, #tpu.memory_space<vmem>>, vector<1x32xf32>
      %29 = vector.shape_cast %28 : vector<1x32xf32> to vector<1x32xf32>
      %30 = vector.broadcast %29 : vector<1x32xf32> to vector<128x32xf32>
      %c0_19 = arith.constant 0 : index
      %c0_20 = arith.constant 0 : index
      %31 = vector.load %arg7[%c0_19, %c0_20] : memref<128x32xf32, #tpu.memory_space<vmem>>, vector<128x32xf32>
      tpu.vector_store %arg7[%c0_19, %c0_20], %30 {strides = array<i32>} : memref<128x32xf32, #tpu.memory_space<vmem>>, vector<128x32xf32>,
    } else {
    }
    %c0 = arith.constant 0 : index
    %c0_1 = arith.constant 0 : index
    %3 = vector.load %arg2[%c0, %c0_1] : memref<128x32xbf16, #tpu.memory_space<vmem>>, vector<128x32xbf16>
    %c0_2 = arith.constant 0 : index
    %c0_3 = arith.constant 0 : index
    %4 = vector.load %arg3[%c0_2, %c0_3] : memref<32x64xbf16, #tpu.memory_space<vmem>>, vector<32x64xbf16>
    %cst = arith.constant dense<0.000000e+00> : vector<128x64xf32>
    %5 = tpu.matmul %3, %4, %cst {dimension_numbers = #tpu.dot_dimension_numbers<[1], [0], [0], [1], [0, 0, 1, 1], [], []>} : vector<128x32xbf16>, vector<32x64xbf16>, vector<128x64xf32> -> vector<128x64xf32>
    %c0_4 = arith.constant 0 : index
    %c0_5 = arith.constant 0 : index
    %6 = vector.load %arg4[%c0_4, %c0_5] : memref<1x64xf32, #tpu.memory_space<vmem>>, vector<1x64xf32>
    %7 = vector.broadcast %6 : vector<1x64xf32> to vector<128x64xf32>
    %8 = arith.addf %5, %7 : vector<128x64xf32>
    %cst_6 = arith.constant 5.000000e-01 : f32
    %9 = vector.broadcast %cst_6 : f32 to vector<128x64xf32>
    %10 = arith.mulf %9, %8 : vector<128x64xf32>
    %11 = arith.mulf %8, %8 : vector<128x64xf32>
    %12 = arith.mulf %11, %8 : vector<128x64xf32>
    %cst_7 = arith.constant 4.471500e-02 : f32
    %13 = vector.broadcast %cst_7 : f32 to vector<128x64xf32>
    %14 = arith.mulf %13, %12 : vector<128x64xf32>
    %15 = arith.addf %8, %14 : vector<128x64xf32>
    %cst_8 = arith.constant 0.797884583 : f32
    %16 = vector.broadcast %cst_8 : f32 to vector<128x64xf32>
    %17 = arith.mulf %16, %15 : vector<128x64xf32>
    %18 = math.tanh %17 : vector<128x64xf32>
    %cst_9 = arith.constant 1.000000e+00 : f32
    %19 = vector.broadcast %cst_9 : f32 to vector<128x64xf32>
    %20 = arith.addf %19, %18 : vector<128x64xf32>
    %21 = arith.mulf %10, %20 : vector<128x64xf32>
    %c0_10 = arith.constant 0 : index
    %c0_11 = arith.constant 0 : index
    %22 = vector.load %arg7[%c0_10, %c0_11] : memref<128x32xf32, #tpu.memory_space<vmem>>, vector<128x32xf32>
    %23 = arith.truncf %21 : vector<128x64xf32> to vector<128x64xbf16>
    %c0_12 = arith.constant 0 : index
    %c0_13 = arith.constant 0 : index
    %24 = vector.load %arg5[%c0_12, %c0_13] : memref<64x32xbf16, #tpu.memory_space<vmem>>, vector<64x32xbf16>
    %cst_14 = arith.constant dense<0.000000e+00> : vector<128x32xf32>
    %25 = tpu.matmul %23, %24, %cst_14 {dimension_numbers = #tpu.dot_dimension_numbers<[1], [0], [0], [1], [0, 0, 1, 1], [], []>} : vector<128x64xbf16>, vector<64x32xbf16>, vector<128x32xf32> -> vector<128x32xf32>
    %26 = arith.addf %22, %25 : vector<128x32xf32>
    %c0_15 = arith.constant 0 : index
    %c0_16 = arith.constant 0 : index
    %27 = vector.load %arg7[%c0_15, %c0_16] : memref<128x32xf32, #tpu.memory_space<vmem>>, vector<128x32xf32>
    tpu.vector_store %arg7[%c0_15, %c0_16], %26 {strides = array<i32>} : memref<128x32xf32, #tpu.memory_space<vmem>>, vector<128x32xf32>,
    return
  }
  func.func @transform_0(%arg0: i32, %arg1: i32) -> (i32, i32) {
    %c0_i32 = arith.constant 0 : i32
    %c0_i32_0 = arith.constant 0 : i32
    return %arg0, %c0_i32 : i32, i32
  }
  func.func @transform_1(%arg0: i32, %arg1: i32) -> (i32, i32) {
    %c0_i32 = arith.constant 0 : i32
    %c0_i32_0 = arith.constant 0 : i32
    return %c0_i32, %arg1 : i32, i32
  }
  func.func @transform_2(%arg0: i32, %arg1: i32) -> (i32, i32) {
    %c0_i32 = arith.constant 0 : i32
    %c0_i32_0 = arith.constant 0 : i32
    return %c0_i32, %arg1 : i32, i32
  }
  func.func @transform_3(%arg0: i32, %arg1: i32) -> (i32, i32) {
    %c0_i32 = arith.constant 0 : i32
    %c0_i32_0 = arith.constant 0 : i32
    return %arg1, %c0_i32 : i32, i32
  }
  func.func @transform_4(%arg0: i32, %arg1: i32) -> (i32, i32) {
    %c0_i32 = arith.constant 0 : i32
    %c0_i32_0 = arith.constant 0 : i32
    %c0_i32_1 = arith.constant 0 : i32
    return %c0_i32, %c0_i32_0 : i32, i32
  }
  func.func @transform_5(%arg0: i32, %arg1: i32) -> (i32, i32) {
    %c0_i32 = arith.constant 0 : i32
    %c0_i32_0 = arith.constant 0 : i32
    return %arg0, %c0_i32 : i32, i32
  }
}

</mosaic_0001>

<bundles_post_ra>
// kernel: tpu_custom_call.1
= control target key start
LH: loop header
LB: loop body
LE: loop exit
PB: predicated region body
PF: predicated region fallthrough
CT: control target
= control target key end

     0   :  { %vm32_vm0 = vcmask 261120   ;;  %vm450_vm1 = vcmask 523264   ;;  %s1152_s1 = inlined_call_operand.vmem [shape: bf16[32,64], index: 1, kind: input, shape index: {}]   ;;  %s1153_s0 = inlined_call_operand.vmem [shape: bf16[128,32], index: 0, kind: input, shape index: {}]   ;;  %s1154_s3 = inlined_call_operand.vmem [shape: bf16[64,32], index: 3, kind: input, shape index: {}]   ;;  %s1155_s4 = inlined_call_operand.vmem [shape: f32[1,32], index: 4, kind: input, shape index: {}]   ;;  %s1156_s5 = inlined_call_operand.vmem [shape: f32[128,32], index: 5, kind: output, shape index: {}]   ;;  %s1157_s2 = inlined_call_operand.vmem [shape: f32[1,64], index: 2, kind: input, shape index: {}]  }
   0x1   :  { %v706_v0 = vld [vmem:[%s1152_s1 + $0x8] sm:$0xff]   ;;  %v707_v1 = vld [vmem:[%s1152_s1] sm:$0xff]   ;;  %v710_v4 = vld [vmem:[%s1153_s0 + $0x10] sm:$0xff]  }
   0x2   :  { %662 = vmatprep.subr.bf16.mxu0 %v706_v0  ;;  %v708_v2 = vld [vmem:[%s1153_s0] sm:$0xff]   ;;  %v709_v3 = vld [vmem:[%s1153_s0 + $0x8] sm:$0xff]   ;;  %v711_v5 = vld [vmem:[%s1153_s0 + $0x18] sm:$0xff]  }
   0x3   :  { %663 = vmatpush3.bf16.msra.mxu0 %v706_v0  ;;  %666 = vmatprep.mubr.msk.bf16.mxu0 %vm32_vm0, %v708_v2  ;;  %v712_v6 = vld [vmem:[%s1153_s0 + $0x20] sm:$0xff]   ;;  %v713_v7 = vld [vmem:[%s1153_s0 + $0x28] sm:$0xff]   ;;  %v714_v8 = vld [vmem:[%s1153_s0 + $0x30] sm:$0xff]  }
   0x4   :  { %664 = vmatprep.subr.bf16.mxu0 %v707_v1  ;;  %v715_v9 = vld [vmem:[%s1153_s0 + $0x38] sm:$0xff]   ;;  %v717_v11 = vld [vmem:[%s1154_s3 + $0x10] sm:$0xff]   ;;  %v718_v12 = vld [vmem:[%s1154_s3 + $0x8] sm:$0xff]  }
   0x5   :  { %v716_v10 = vld [vmem:[%s1154_s3 + $0x18] sm:$0xff]   ;;  %v719_v13 = vld [vmem:[%s1154_s3] sm:$0xff]  }
   0x6   :  { %682 = vmatprep.subr.bf16.mxu1 %v716_v10  ;;  %v608_v14 = vld [vmem:[%s1155_s4] ss:$0 sm:$0xff] }
   0x7   :  { %665 = vmatpush3.bf16.msra.mxu0 %v707_v1  ;;  %683 = vmatpush3.bf16.msra.mxu1 %v716_v10  ;;  %35 = vst.msk [vmem:[%s1156_s5 + $0x10] sm:$0xff] %vm32_vm0, %v608_v14  ;;  %33 = vst.msk [vmem:[%s1156_s5] sm:$0xff] %vm32_vm0, %v608_v14  ;;  %v902_v15 = vld [vmem:[%s1157_s2] ss:$0 sm:$0xff] }
   0x8   :  { %684 = vmatprep.subr.bf16.mxu1 %v717_v11  ;;  %34 = vst.msk [vmem:[%s1156_s5 + $0x8] sm:$0xff] %vm32_vm0, %v608_v14  ;;  %36 = vst.msk [vmem:[%s1156_s5 + $0x18] sm:$0xff] %vm32_vm0, %v608_v14 }
   0x9   :  { %37 = vst.msk [vmem:[%s1156_s5 + $0x20] sm:$0xff] %vm32_vm0, %v608_v14  ;;  %38 = vst.msk [vmem:[%s1156_s5 + $0x28] sm:$0xff] %vm32_vm0, %v608_v14 }
   0xa   :  { %667 = vmatmul.mubr.msk.bf16.vlgmr.msra.gmra.mxu0 %vm32_vm0, %v709_v3  ;;  %39 = vst.msk [vmem:[%s1156_s5 + $0x30] sm:$0xff] %vm32_vm0, %v608_v14  ;;  %40 = vst.msk [vmem:[%s1156_s5 + $0x38] sm:$0xff] %vm32_vm0, %v608_v14 }
   0xb   :  { %670 = vmatprep.mubr.msk.bf16.mxu0 %vm32_vm0, %v710_v4  ;;  %685 = vmatpush3.bf16.msra.mxu1 %v717_v11  ;;  %41 = vst.msk [vmem:[%s1156_s5 + $0x40] sm:$0xff] %vm32_vm0, %v608_v14  ;;  %42 = vst.msk [vmem:[%s1156_s5 + $0x48] sm:$0xff] %vm32_vm0, %v608_v14 }
   0xc   :  { %686 = vmatprep.subr.bf16.mxu1 %v718_v12  ;;  %43 = vst.msk [vmem:[%s1156_s5 + $0x50] sm:$0xff] %vm32_vm0, %v608_v14  ;;  %44 = vst.msk [vmem:[%s1156_s5 + $0x58] sm:$0xff] %vm32_vm0, %v608_v14 }
   0xd   :  { %45 = vst.msk [vmem:[%s1156_s5 + $0x60] sm:$0xff] %vm32_vm0, %v608_v14  ;;  %46 = vst.msk [vmem:[%s1156_s5 + $0x68] sm:$0xff] %vm32_vm0, %v608_v14 }
   0xe   :  { %47 = vst.msk [vmem:[%s1156_s5 + $0x70] sm:$0xff] %vm32_vm0, %v608_v14  ;;  %48 = vst.msk [vmem:[%s1156_s5 + $0x78] sm:$0xff] %vm32_vm0, %v608_v14 }
   0xf   :  { %687 = vmatpush3.bf16.msra.mxu1 %v718_v12 }
  0x10   :  { %688 = vmatprep.subr.bf16.mxu1 %v719_v13 }
  0x12   :  { %671 = vmatmul.mubr.msk.bf16.gmra.mxu0 %vm32_vm0, %v711_v5 }
  0x13   :  { %674 = vmatprep.mubr.msk.bf16.mxu0 %vm32_vm0, %v712_v6  ;;  %689 = vmatpush3.bf16.msra.mxu1 %v719_v13 }
  0x1a   :  { %675 = vmatmul.mubr.msk.bf16.gmra.mxu0 %vm32_vm0, %v713_v7 }
  0x1b   :  { %678 = vmatprep.mubr.msk.bf16.mxu0 %vm32_vm0, %v714_v8 }
  0x22   :  { %679 = vmatmul.mubr.msk.bf16.gmra.mxu0 %vm32_vm0, %v715_v9 }
  0xca   :  { %v668_v16 = vpop.f32.mrf.mxu0 }
  0xcb   :  { %v905_v17 = vadd.f32 %v668_v16, %v902_v15 }
  0xcc   :  { %v187_v18 = vpop.f32.mrf.mxu0 }
  0xcd   :  { %v908_v19 = vadd.f32 %v902_v15, %v187_v18  ;;  %v268_v22 = vmul.f32 %v905_v17, %v905_v17 }
  0xce   :  { %v669_v20 = vpop.f32.mrf.mxu0 }
  0xcf   :  { %v911_v21 = vadd.f32 %v669_v20, %v902_v15  ;;  %v266_v23 = vmul.f32 %v908_v19, %v908_v19  ;;  %v284_v28 = vmul.f32 %v268_v22, %v905_v17 }
  0xd0   :  { %v190_v24 = vpop.f32.mrf.mxu0 }
  0xd1   :  { %v269_v25 = vmul.f32 %v911_v21, %v911_v21  ;;  %v920_v27 = vadd.f32 %v902_v15, %v190_v24  ;;  %v282_v29 = vmul.f32 %v266_v23, %v908_v19  ;;  %v300_v35 = vmul.f32 0.044715, %v284_v28 }
  0xd2   :  { %v672_v26 = vpop.f32.mrf.mxu0 }
  0xd3   :  { %v285_v31 = vmul.f32 %v269_v25, %v911_v21  ;;  %v267_v34 = vmul.f32 %v920_v27, %v920_v27  ;;  %v298_v36 = vmul.f32 0.044715, %v282_v29  ;;  %v939_v42 = vadd.f32 %v672_v26, %v902_v15 }
  0xd4   :  { %v203_v30 = vpop.f32.mrf.mxu0  ;;  %v316_v47 = vadd.f32 %v300_v35, %v905_v17 }
  0xd5   :  { %v926_v32 = vadd.f32 %v902_v15, %v203_v30  ;;  %v301_v41 = vmul.f32 0.044715, %v285_v31  ;;  %v283_v45 = vmul.f32 %v267_v34, %v920_v27  ;;  %v314_v48 = vadd.f32 %v298_v36, %v908_v19 }
  0xd6   :  { %v673_v33 = vpop.f32.mrf.mxu0  ;;  %v272_v55 = vmul.f32 %v939_v42, %v939_v42  ;;  %v332_v60 = vmul.f32 0.7978846, %v316_v47 }
  0xd7   :  { %v270_v37 = vmul.f32 %v926_v32, %v926_v32  ;;  %v933_v38 = vadd.f32 %v673_v33, %v902_v15  ;;  %v317_v54 = vadd.f32 %v301_v41, %v911_v21  ;;  %v299_v57 = vmul.f32 0.044715, %v283_v45 }
  0xd8   :  { %v206_v39 = vpop.f32.mrf.mxu0  ;;  %v330_v61 = vmul.f32 0.7978846, %v314_v48  ;;  %v288_v6 = vmul.f32 %v272_v55, %v939_v42  ;;  %720 = vtanh.f32 %v332_v60 }
  0xd9   :  { %v936_v40 = vadd.f32 %v902_v15, %v206_v39  ;;  %v286_v43 = vmul.f32 %v270_v37, %v926_v32  ;;  %v273_v49 = vmul.f32 %v933_v38, %v933_v38  ;;  %v333_v5 = vmul.f32 0.7978846, %v317_v54 }
  0xda   :  { %v676_v44 = vpop.f32.mrf.mxu0  ;;  %v315_v9 = vadd.f32 %v299_v57, %v920_v27  ;;  %722 = vtanh.f32 %v330_v61  ;;  %v304_v22 = vmul.f32 0.044715, %v288_v6 }
  0xdb   :  { %v271_v46 = vmul.f32 %v936_v40, %v936_v40  ;;  %v302_v51 = vmul.f32 0.044715, %v286_v43  ;;  %v289_v62 = vmul.f32 %v273_v49, %v933_v38  ;;  %v970_v7 = vadd.f32 %v676_v44, %v902_v15 }
  0xdc   :  { %v219_v50 = vpop.f32.mrf.mxu0  ;;  %724 = vtanh.f32 %v333_v5  ;;  %v331_v26 = vmul.f32 0.7978846, %v315_v9  ;;  %v320_v39 = vadd.f32 %v304_v22, %v939_v42  ;;  %v255_v22 = vmul.f32 0.5, %v936_v40 }
  0xdd   :  { %v287_v52 = vmul.f32 %v271_v46, %v936_v40  ;;  %v951_v53 = vadd.f32 %v902_v15, %v219_v50  ;;  %v318_v1 = vadd.f32 %v302_v51, %v926_v32  ;;  %v305_v11 = vmul.f32 0.044715, %v289_v62 }
  0xde   :  { %v677_v56 = vpop.f32.mrf.mxu0  ;;  %v276_v23 = vmul.f32 %v970_v7, %v970_v7  ;;  %v336_v54 = vmul.f32 0.7978846, %v320_v39 }
  0xdf   :  { %v303_v58 = vmul.f32 0.044715, %v287_v52  ;;  %v274_v59 = vmul.f32 %v951_v53, %v951_v53  ;;  %v960_v63 = vadd.f32 %v677_v56, %v902_v15  ;;  %v334_v16 = vmul.f32 0.7978846, %v318_v1 }
  0xe0   :  { %v222_v0 = vpop.f32.mrf.mxu0  ;;  %v321_v29 = vadd.f32 %v305_v11, %v933_v38  ;;  %v292_v41 = vmul.f32 %v276_v23, %v970_v7 }
  0xe1   :  { %v319_v2 = vadd.f32 %v303_v58, %v936_v40  ;;  %v290_v3 = vmul.f32 %v274_v59, %v951_v53  ;;  %v966_v4 = vadd.f32 %v902_v15, %v222_v0  ;;  %v277_v12 = vmul.f32 %v960_v63, %v960_v63 }
  0xe2   :  { %v680_v8 = vpop.f32.mrf.mxu0  ;;  %v337_v46 = vmul.f32 0.7978846, %v321_v29  ;;  %v308_v55 = vmul.f32 0.044715, %v292_v41 }
  0xe3   :  { %v335_v10 = vmul.f32 0.7978846, %v319_v2  ;;  %v275_v13 = vmul.f32 %v966_v4, %v966_v4  ;;  %v306_v18 = vmul.f32 0.044715, %v290_v3  ;;  %v293_v30 = vmul.f32 %v277_v12, %v960_v63 }
  0xe4   :  { %v235_v14 = vpop.f32.mrf.mxu0  ;;  %v999_v44 = vadd.f32 %v680_v8, %v902_v15  ;;  %v324_v0 = vadd.f32 %v308_v55, %v970_v7  ;;  %v257_v55 = vmul.f32 0.5, %v933_v38 }
  0xe5   :  { %v978_v20 = vadd.f32 %v902_v15, %v235_v14  ;;  %v291_v24 = vmul.f32 %v275_v13, %v966_v4  ;;  %726 = vtanh.f32 %v335_v10  ;;  %v322_v35 = vadd.f32 %v306_v18, %v951_v53  ;;  %v721_v59 = vpop.eup %720 }
  0xe6   :  { %v681_v25 = vpop.f32.mrf.mxu0  ;;  %728 = vtanh.f32 %v334_v16  ;;  %v309_v47 = vmul.f32 0.044715, %v293_v30  ;;  %v340_v11 = vmul.f32 0.7978846, %v324_v0  ;;  %v250_v16 = vmul.f32 0.5, %v908_v19 }
  0xe7   :  { %v278_v28 = vmul.f32 %v978_v20, %v978_v20  ;;  %v307_v31 = vmul.f32 0.044715, %v291_v24  ;;  %v988_v33 = vadd.f32 %v681_v25, %v902_v15  ;;  %v338_v50 = vmul.f32 0.7978846, %v322_v35  ;;  %v723_v62 = vpop.eup %722 }
  0xe8   :  { %v238_v34 = vpop.f32.mrf.mxu0  ;;  %730 = vtanh.f32 %v331_v26  ;;  %v325_v57 = vadd.f32 %v309_v47, %v960_v63  ;;  %v362_v23 = vadd.f32 1.0, %v723_v62  ;;  %v253_v26 = vmul.f32 0.5, %v911_v21 }
  0xe9   :  { %v294_v36 = vmul.f32 %v278_v28, %v978_v20  ;;  %v993_v37 = vadd.f32 %v902_v15, %v238_v34  ;;  %v323_v43 = vadd.f32 %v307_v31, %v966_v4  ;;  %v281_v49 = vmul.f32 %v988_v33, %v988_v33  ;;  %v725_v2 = vpop.eup %724 }
  0xea   :  { %v280_v15 = vmul.f32 %v999_v44, %v999_v44  ;;  %v341_v6 = vmul.f32 0.7978846, %v325_v57  ;;  %v365_v18 = vadd.f32 1.0, %v725_v2  ;;  %v364_v29 = vadd.f32 1.0, %v721_v59 }
  0xeb   :  { %v279_v45 = vmul.f32 %v993_v37, %v993_v37  ;;  %v339_v48 = vmul.f32 0.7978846, %v323_v43  ;;  %v310_v51 = vmul.f32 0.044715, %v294_v36  ;;  %v297_v58 = vmul.f32 %v281_v49, %v988_v33 }
  0xec   :  { %v296_v1 = vmul.f32 %v280_v15, %v999_v44  ;;  %v254_v30 = vmul.f32 0.5, %v926_v32  ;;  %v251_v31 = vmul.f32 0.5, %v920_v27  ;;  %v252_v36 = vmul.f32 0.5, %v905_v17 }
  0xed   :  { %v295_v52 = vmul.f32 %v279_v45, %v993_v37  ;;  %732 = vtanh.f32 %v339_v48  ;;  %v326_v60 = vadd.f32 %v310_v51, %v978_v20  ;;  %v313_v8 = vmul.f32 0.044715, %v297_v58 }
  0xee   :  { %734 = vtanh.f32 %v337_v46  ;;  %v312_v12 = vmul.f32 0.044715, %v296_v1  ;;  %v381_v39 = vmul.f32 %v365_v18, %v253_v26  ;;  %v378_v43 = vmul.f32 %v362_v23, %v250_v16 }
  0xef   :  { %v311_v56 = vmul.f32 0.044715, %v295_v52  ;;  %736 = vtanh.f32 %v338_v50  ;;  %v342_v9 = vmul.f32 0.7978846, %v326_v60  ;;  %v329_v14 = vadd.f32 %v313_v8, %v988_v33 }
  0xf0   :  { %738 = vtanh.f32 %v336_v54  ;;  %v328_v28 = vadd.f32 %v312_v12, %v999_v44  ;;  %v380_v48 = vmul.f32 %v364_v29, %v252_v36  ;;  %v259_v54 = vmul.f32 0.5, %v966_v4 }
  0xf1   :  { %v327_v61 = vadd.f32 %v311_v56, %v993_v37  ;;  %v345_v40 = vmul.f32 0.7978846, %v329_v14  ;;  %v258_v56 = vmul.f32 0.5, %v951_v53  ;;  %v256_v59 = vmul.f32 0.5, %v939_v42 }
  0xf2   :  { %v727_v5 = vpop.eup %726  ;;  %v344_v47 = vmul.f32 0.7978846, %v328_v28  ;;  %v411_v27 = vpack.c.bf16 %v381_v39, %v380_v48  ;;  %v261_v53 = vmul.f32 0.5, %v960_v63  ;;  %v262_v42 = vmul.f32 0.5, %v978_v20  ;;  %v396_v28 = vld [vmem:[%s1156_s5 + $0x10] sm:$0xff] }
  0xf3   :  { %v343_v3 = vmul.f32 0.7978846, %v327_v61  ;;  %v729_v10 = vpop.eup %728  ;;  %v367_v13 = vadd.f32 1.0, %v727_v5  ;;  %v265_v63 = vmul.f32 0.5, %v988_v33  ;;  %v264_v20 = vmul.f32 0.5, %v999_v44  ;;  %v394_v33 = vld [vmem:[%s1156_s5] sm:$0xff] }
  0xf4   :  { %v366_v24 = vadd.f32 1.0, %v729_v10  ;;  %v397_v44 = vld [vmem:[%s1156_s5 + $0x18] sm:$0xff]  ;;  %v400_v39 = vld [vmem:[%s1156_s5 + $0x30] sm:$0xff] }
  0xf5   :  { %740 = vtanh.f32 %v343_v3  ;;  %v731_v25 = vpop.eup %730  ;;  %v383_v35 = vmul.f32 %v367_v13, %v255_v22 }
  0xf6   :  { %742 = vtanh.f32 %v341_v6  ;;  %v363_v34 = vadd.f32 1.0, %v731_v25  ;;  %v382_v46 = vmul.f32 %v366_v24, %v254_v30  ;;  %v263_v6 = vmul.f32 0.5, %v993_v37 }
  0xf7   :  { %744 = vtanh.f32 %v342_v9 }
  0xf8   :  { %746 = vtanh.f32 %v340_v11  ;;  %v379_v45 = vmul.f32 %v363_v34, %v251_v31  ;;  %v412_v32 = vpack.c.bf16 %v383_v35, %v382_v46  ;;  %v260_v11 = vmul.f32 0.5, %v970_v7 }
  0xf9   :  { %748 = vtanh.f32 %v345_v40 }
  0xfa   :  { %v733_v19 = vpop.eup %732  ;;  %v410_v50 = vpack.c.bf16 %v379_v45, %v378_v43  ;;  %750 = vtanh.f32 %v344_v47  ;;  %v398_v45 = vld [vmem:[%s1156_s5 + $0x20] sm:$0xff]  ;;  %v401_v47 = vld [vmem:[%s1156_s5 + $0x38] sm:$0xff] }
  0xfb   :  { %v735_v41 = vpop.eup %734  ;;  %v371_v51 = vadd.f32 1.0, %v733_v19  ;;  %v395_v19 = vld [vmem:[%s1156_s5 + $0x8] sm:$0xff] }
  0xfc   :  { %v737_v21 = vpop.eup %736  ;;  %v369_v52 = vadd.f32 1.0, %v735_v41  ;;  %690 = vmatprep.mubr.msk.bf16.mxu1 %vm450_vm1, %v410_v50  ;;  %v399_v50 = vld [vmem:[%s1156_s5 + $0x28] sm:$0xff] }
  0xfd   :  { %v739_v49 = vpop.eup %738  ;;  %v370_v17 = vadd.f32 1.0, %v737_v21  ;;  %691 = vmatmul.mubr.msk.bf16.vlgmr.msra.gmra.mxu1 %vm450_vm1, %v411_v27  ;;  %v387_v57 = vmul.f32 %v371_v51, %v259_v54  ;;  %v404_v27 = vld [vmem:[%s1156_s5 + $0x50] sm:$0xff] }
  0xfe   :  { %v368_v15 = vadd.f32 1.0, %v739_v49  ;;  %694 = vmatprep.mubr.msk.bf16.mxu1 %vm450_vm1, %v412_v32  ;;  %v385_v60 = vmul.f32 %v369_v52, %v257_v55 }
  0xff   :  { %v386_v4 = vmul.f32 %v370_v17, %v258_v56  ;;  %v402_v17 = vld [vmem:[%s1156_s5 + $0x40] sm:$0xff]  ;;  %v405_v56 = vld [vmem:[%s1156_s5 + $0x58] sm:$0xff] }
 0x100   :  { %v384_v0 = vmul.f32 %v368_v15, %v256_v59  ;;  %v403_v59 = vld [vmem:[%s1156_s5 + $0x48] sm:$0xff] }
 0x101   :  { %v414_v2 = vpack.c.bf16 %v387_v57, %v386_v4  ;;  %v408_v4 = vld [vmem:[%s1156_s5 + $0x70] sm:$0xff] }
 0x102   :  { %v741_v58 = vpop.eup %740  ;;  %v413_v3 = vpack.c.bf16 %v385_v60, %v384_v0 }
 0x103   :  { %v743_v61 = vpop.eup %742  ;;  %v375_v38 = vadd.f32 1.0, %v741_v58 }
 0x104   :  { %v745_v62 = vpop.eup %744  ;;  %v373_v5 = vadd.f32 1.0, %v743_v61 }
 0x105   :  { %v747_v1 = vpop.eup %746  ;;  %v374_v8 = vadd.f32 1.0, %v745_v62  ;;  %695 = vmatmul.mubr.msk.bf16.gmra.mxu1 %vm450_vm1, %v413_v3  ;;  %v391_v10 = vmul.f32 %v375_v38, %v263_v6  ;;  %v409_v3 = vld [vmem:[%s1156_s5 + $0x78] sm:$0xff] }
 0x106   :  { %v372_v9 = vadd.f32 1.0, %v747_v1  ;;  %698 = vmatprep.mubr.msk.bf16.mxu1 %vm450_vm1, %v414_v2  ;;  %v389_v12 = vmul.f32 %v373_v5, %v261_v53  ;;  %v749_v13 = vpop.eup %748  ;;  %v406_v1 = vld [vmem:[%s1156_s5 + $0x60] sm:$0xff] }
 0x107   :  { %v390_v14 = vmul.f32 %v374_v8, %v262_v42  ;;  %v751_v18 = vpop.eup %750  ;;  %v377_v23 = vadd.f32 1.0, %v749_v13  ;;  %v407_v8 = vld [vmem:[%s1156_s5 + $0x68] sm:$0xff] }
 0x108   :  { %v388_v16 = vmul.f32 %v372_v9, %v260_v11  ;;  %v376_v24 = vadd.f32 1.0, %v751_v18 }
 0x109   :  { %v416_v22 = vpack.c.bf16 %v391_v10, %v390_v14  ;;  %v393_v25 = vmul.f32 %v377_v23, %v265_v63 }
 0x10a   :  { %v415_v37 = vpack.c.bf16 %v389_v12, %v388_v16  ;;  %v392_v26 = vmul.f32 %v376_v24, %v264_v20 }
 0x10c   :  { %v417_v7 = vpack.c.bf16 %v393_v25, %v392_v26 }
 0x10d   :  { %699 = vmatmul.mubr.msk.bf16.gmra.mxu1 %vm450_vm1, %v415_v37 }
 0x10e   :  { %702 = vmatprep.mubr.msk.bf16.mxu1 %vm450_vm1, %v416_v22 }
 0x115   :  { %703 = vmatmul.mubr.msk.bf16.gmra.mxu1 %vm450_vm1, %v417_v7 }
 0x1bd   :  { %v692_v29 = vpop.f32.mrf.mxu1 }
 0x1be   :  { %v574_v30 = vadd.f32 %v692_v29, %v396_v28 }
 0x1bf   :  { %v509_v31 = vpop.f32.mrf.mxu1 }
 0x1c0   :  { %590 = vst.msk [vmem:[%s1156_s5 + $0x10] sm:$0xff] %vm32_vm0, %v574_v30  ;;  %v572_v34 = vadd.f32 %v509_v31, %v394_v33 }
 0x1c1   :  { %v693_v35 = vpop.f32.mrf.mxu1 }
 0x1c2   :  { %588 = vst.msk [vmem:[%s1156_s5] sm:$0xff] %vm32_vm0, %v572_v34  ;;  %v575_v36 = vadd.f32 %v693_v35, %v397_v44 }
 0x1c3   :  { %v512_v40 = vpop.f32.mrf.mxu1 }
 0x1c4   :  { %591 = vst.msk [vmem:[%s1156_s5 + $0x18] sm:$0xff] %vm32_vm0, %v575_v36  ;;  %v573_v41 = vadd.f32 %v512_v40, %v395_v19 }
 0x1c5   :  { %v696_v43 = vpop.f32.mrf.mxu1 }
 0x1c6   :  { %589 = vst.msk [vmem:[%s1156_s5 + $0x8] sm:$0xff] %vm32_vm0, %v573_v41  ;;  %v578_v46 = vadd.f32 %v696_v43, %v400_v39 }
 0x1c7   :  { %v525_v21 = vpop.f32.mrf.mxu1 }
 0x1c8   :  { %594 = vst.msk [vmem:[%s1156_s5 + $0x30] sm:$0xff] %vm32_vm0, %v578_v46  ;;  %v576_v48 = vadd.f32 %v525_v21, %v398_v45 }
 0x1c9   :  { %v697_v49 = vpop.f32.mrf.mxu1 }
 0x1ca   :  { %592 = vst.msk [vmem:[%s1156_s5 + $0x20] sm:$0xff] %vm32_vm0, %v576_v48  ;;  %v579_v32 = vadd.f32 %v697_v49, %v401_v47 }
 0x1cb   :  { %v528_v51 = vpop.f32.mrf.mxu1 }
 0x1cc   :  { %595 = vst.msk [vmem:[%s1156_s5 + $0x38] sm:$0xff] %vm32_vm0, %v579_v32  ;;  %v577_v52 = vadd.f32 %v528_v51, %v399_v50 }
 0x1cd   :  { %v700_v54 = vpop.f32.mrf.mxu1 }
 0x1ce   :  { %593 = vst.msk [vmem:[%s1156_s5 + $0x28] sm:$0xff] %vm32_vm0, %v577_v52  ;;  %v582_v55 = vadd.f32 %v700_v54, %v404_v27 }
 0x1cf   :  { %v541_v15 = vpop.f32.mrf.mxu1 }
 0x1d0   :  { %598 = vst.msk [vmem:[%s1156_s5 + $0x50] sm:$0xff] %vm32_vm0, %v582_v55  ;;  %v580_v57 = vadd.f32 %v541_v15, %v402_v17 }
 0x1d1   :  { %v701_v58 = vpop.f32.mrf.mxu1 }
 0x1d2   :  { %596 = vst.msk [vmem:[%s1156_s5 + $0x40] sm:$0xff] %vm32_vm0, %v580_v57  ;;  %v583_v60 = vadd.f32 %v701_v58, %v405_v56 }
 0x1d3   :  { %v544_v61 = vpop.f32.mrf.mxu1 }
 0x1d4   :  { %599 = vst.msk [vmem:[%s1156_s5 + $0x58] sm:$0xff] %vm32_vm0, %v583_v60  ;;  %v581_v62 = vadd.f32 %v544_v61, %v403_v59 }
 0x1d5   :  { %v704_v0 = vpop.f32.mrf.mxu1 }
 0x1d6   :  { %597 = vst.msk [vmem:[%s1156_s5 + $0x48] sm:$0xff] %vm32_vm0, %v581_v62  ;;  %v586_v2 = vadd.f32 %v704_v0, %v408_v4 }
 0x1d7   :  { %v557_v38 = vpop.f32.mrf.mxu1 }
 0x1d8   :  { %602 = vst.msk [vmem:[%s1156_s5 + $0x70] sm:$0xff] %vm32_vm0, %v586_v2  ;;  %v584_v5 = vadd.f32 %v557_v38, %v406_v1 }
 0x1d9   :  { %v705_v6 = vpop.f32.mrf.mxu1 }
 0x1da   :  { %600 = vst.msk [vmem:[%s1156_s5 + $0x60] sm:$0xff] %vm32_vm0, %v584_v5  ;;  %v587_v53 = vadd.f32 %v705_v6, %v409_v3 }
 0x1db   :  { %v560_v9 = vpop.f32.mrf.mxu1 }
 0x1dc   :  { %603 = vst.msk [vmem:[%s1156_s5 + $0x78] sm:$0xff] %vm32_vm0, %v587_v53  ;;  %v585_v42 = vadd.f32 %v560_v9, %v407_v8 }
 0x1de   :  { %601 = vst.msk [vmem:[%s1156_s5 + $0x68] sm:$0xff] %vm32_vm0, %v585_v42 }

</bundles_post_ra>
